<compile_context>
chip_gen: v7x
topology: tpu7x:2x2x1
jax: 0.10.0
libtpu: 0.0.40
codegen_flags: <defaults>
</compile_context>

<pallas_src>
import functools

import jax
import jax.numpy as jnp
from jax.experimental import pallas as pl
from jax.experimental.pallas import tpu as pltpu

_SUBLANE = 8


def _round_up(n, m):
    return ((n + m - 1) // m) * m


def _dqn_kernel(x_ref, w1_ref, b1_ref, w2_ref, b2_ref, w3_ref, b3_ref, o_ref):
    x = x_ref[...]

    h1 = jnp.dot(
        x, w1_ref[...],
        preferred_element_type=jnp.float32,
        precision=jax.lax.Precision.HIGHEST,
    )
    h1 = jnp.maximum(h1 + b1_ref[...], 0.0)

    h2 = jnp.dot(
        h1, w2_ref[...],
        preferred_element_type=jnp.float32,
        precision=jax.lax.Precision.HIGHEST,
    )
    h2 = jnp.maximum(h2 + b2_ref[...], 0.0)

    out = jnp.dot(
        h2, w3_ref[...],
        preferred_element_type=jnp.float32,
        precision=jax.lax.Precision.HIGHEST,
    )
    o_ref[...] = (out + b3_ref[...]).astype(o_ref.dtype)


@functools.partial(jax.jit, static_argnames=("block_batch",))
def dqn_forward(x, params, block_batch=2048):
    w1, b1, w2, b2, w3, b3 = params
    batch, state_size = x.shape
    action_size = w3.shape[1]

    # --- batch tiling (multiple of the 8-row sublane granule) ---------------
    tb = min(block_batch, _round_up(batch, _SUBLANE))
    tb = _round_up(tb, _SUBLANE)
    padded_batch = _round_up(batch, tb)
    grid = (padded_batch // tb,)

    # --- streamed input: zero-padded to a whole number of tiles -------------
    x_in = x.astype(jnp.float32)
    if padded_batch != batch:
        x_in = jnp.pad(x_in, ((0, padded_batch - batch), (0, 0)))

    resident = lambda shape: pl.BlockSpec(shape, lambda i: (0, 0))  # VMEM-resident

    out = pl.pallas_call(
        _dqn_kernel,
        out_shape=jax.ShapeDtypeStruct((padded_batch, action_size), jnp.float32),
        grid=grid,
        in_specs=[
            pl.BlockSpec((tb, state_size), lambda i: (i, 0)),  # streamed x tiles
            resident(w1.shape), resident(b1.shape),
            resident(w2.shape), resident(b2.shape),
            resident(w3.shape), resident(b3.shape),
        ],
        out_specs=pl.BlockSpec((tb, action_size), lambda i: (i, 0)),
        compiler_params=pltpu.CompilerParams(
            dimension_semantics=("parallel",),  # shard batch tiles across TCs (v7x)
        ),
    )(x_in, w1, b1, w2, b2, w3, b3)

    return out[:batch]


def init_params(key, state_size, action_size, hidden=24):
    """Deterministic init mimicking PyTorch nn.Linear default
    (uniform in [-1/sqrt(fan_in), 1/sqrt(fan_in)])."""
    ks = jax.random.split(key, 6)

    def linear(kw, kb, fan_in, fan_out):
        bound = 1.0 / jnp.sqrt(jnp.float32(fan_in))
        # stored as (in, out) so the kernel does x @ W
        w = jax.random.uniform(kw, (fan_in, fan_out), jnp.float32, -bound, bound)
        b = jax.random.uniform(kb, (1, fan_out), jnp.float32, -bound, bound)
        return w, b

    w1, b1 = linear(ks[0], ks[1], state_size, hidden)
    w2, b2 = linear(ks[2], ks[3], hidden, hidden)
    w3, b3 = linear(ks[4], ks[5], hidden, action_size)
    return (w1, b1, w2, b2, w3, b3)


def reference_forward(x, params):
    w1, b1, w2, b2, w3, b3 = params
    hp = jax.lax.Precision.HIGHEST
    h1 = jnp.maximum(jnp.dot(x, w1, precision=hp) + b1, 0.0)
    h2 = jnp.maximum(jnp.dot(h1, w2, precision=hp) + b2, 0.0)
    return jnp.dot(h2, w3, precision=hp) + b3


if __name__ == "__main__":
    key = jax.random.PRNGKey(0)
    k_x, k_p = jax.random.split(key)

    batch, state_size, action_size = 2, 8, 4
    params = init_params(k_p, state_size, action_size)

    # --- small-batch smoke test (batch=2, single 8-row tile) ----------------
    x_small = jax.random.normal(k_x, (batch, state_size), jnp.float32)
    out_small = dqn_forward(x_small, params)
    jax.block_until_ready(out_small)

    ref_small = reference_forward(x_small, params)
    assert out_small.shape == (batch, action_size)
    assert jnp.allclose(out_small, ref_small, atol=1e-4, rtol=1e-4)

    # --- larger, non-divisible batch: exercises tiling + tail padding -------
    big_batch = 1000  # not a multiple of the 256-row tile -> padded tail tile
    x_big = jax.random.normal(k_x, (big_batch, state_size), jnp.float32)
    out_big = dqn_forward(x_big, params, block_batch=256)
    jax.block_until_ready(out_big)

    ref_big = reference_forward(x_big, params)
    assert out_big.shape == (big_batch, action_size)
    assert jnp.allclose(out_big, ref_big, atol=1e-4, rtol=1e-4)

    print("KERNEL_OK")
</pallas_src>

<mosaic_0001>
module attributes {stable_mosaic.version = 11 : i64} {
  func.func @_dqn_kernel(%arg0: i32, %arg1: memref<8x8xf32, #tpu.memory_space<vmem>>, %arg2: memref<8x24xf32, #tpu.memory_space<vmem>>, %arg3: memref<1x24xf32, #tpu.memory_space<vmem>>, %arg4: memref<24x24xf32, #tpu.memory_space<vmem>>, %arg5: memref<1x24xf32, #tpu.memory_space<vmem>>, %arg6: memref<24x4xf32, #tpu.memory_space<vmem>>, %arg7: memref<1x4xf32, #tpu.memory_space<vmem>>, %arg8: memref<8x4xf32, #tpu.memory_space<vmem>>) attributes {dimension_semantics = [#tpu.dimension_semantics<parallel>], iteration_bounds = array<i64: 1>, scalar_prefetch = 0 : i64, scratch_operands = 0 : i64, tpu.core_type = #tpu.core_type<tc>, window_params = [{transform_indices = @transform_0, window_bounds = array<i64: 8, 8>}, {pipeline_mode = #tpu.pipeline_mode<synchronous>, transform_indices = @transform_1, window_bounds = array<i64: 8, 24>}, {pipeline_mode = #tpu.pipeline_mode<synchronous>, transform_indices = @transform_2, window_bounds = array<i64: 1, 24>}, {pipeline_mode = #tpu.pipeline_mode<synchronous>, transform_indices = @transform_3, window_bounds = array<i64: 24, 24>}, {pipeline_mode = #tpu.pipeline_mode<synchronous>, transform_indices = @transform_4, window_bounds = array<i64: 1, 24>}, {pipeline_mode = #tpu.pipeline_mode<synchronous>, transform_indices = @transform_5, window_bounds = array<i64: 24, 4>}, {pipeline_mode = #tpu.pipeline_mode<synchronous>, transform_indices = @transform_6, window_bounds = array<i64: 1, 4>}, {transform_indices = @transform_7, window_bounds = array<i64: 8, 4>}]} {
    %c0 = arith.constant 0 : index
    %c0_0 = arith.constant 0 : index
    %0 = vector.load %arg1[%c0, %c0_0] : memref<8x8xf32, #tpu.memory_space<vmem>>, vector<8x8xf32>
    %c0_1 = arith.constant 0 : index
    %c0_2 = arith.constant 0 : index
    %1 = vector.load %arg2[%c0_1, %c0_2] : memref<8x24xf32, #tpu.memory_space<vmem>>, vector<8x24xf32>
    %cst = arith.constant dense<0.000000e+00> : vector<8x24xf32>
    %2 = tpu.matmul %0, %1, %cst {dimension_numbers = #tpu.dot_dimension_numbers<[1], [0], [0], [1], [0, 0, 1, 1], [], []>, precision = #tpu.contract_precision<fp32>} : vector<8x8xf32>, vector<8x24xf32>, vector<8x24xf32> -> vector<8x24xf32>
    %c0_3 = arith.constant 0 : index
    %c0_4 = arith.constant 0 : index
    %3 = vector.load %arg3[%c0_3, %c0_4] : memref<1x24xf32, #tpu.memory_space<vmem>>, vector<1x24xf32>
    %4 = vector.broadcast %3 : vector<1x24xf32> to vector<8x24xf32>
    %5 = arith.addf %2, %4 : vector<8x24xf32>
    %cst_5 = arith.constant 0.000000e+00 : f32
    %6 = vector.broadcast %cst_5 : f32 to vector<8x24xf32>
    %7 = arith.maximumf %5, %6 : vector<8x24xf32>
    %c0_6 = arith.constant 0 : index
    %c0_7 = arith.constant 0 : index
    %8 = vector.load %arg4[%c0_6, %c0_7] : memref<24x24xf32, #tpu.memory_space<vmem>>, vector<24x24xf32>
    %cst_8 = arith.constant dense<0.000000e+00> : vector<8x24xf32>
    %9 = tpu.matmul %7, %8, %cst_8 {dimension_numbers = #tpu.dot_dimension_numbers<[1], [0], [0], [1], [0, 0, 1, 1], [], []>, precision = #tpu.contract_precision<fp32>} : vector<8x24xf32>, vector<24x24xf32>, vector<8x24xf32> -> vector<8x24xf32>
    %c0_9 = arith.constant 0 : index
    %c0_10 = arith.constant 0 : index
    %10 = vector.load %arg5[%c0_9, %c0_10] : memref<1x24xf32, #tpu.memory_space<vmem>>, vector<1x24xf32>
    %11 = vector.broadcast %10 : vector<1x24xf32> to vector<8x24xf32>
    %12 = arith.addf %9, %11 : vector<8x24xf32>
    %cst_11 = arith.constant 0.000000e+00 : f32
    %13 = vector.broadcast %cst_11 : f32 to vector<8x24xf32>
    %14 = arith.maximumf %12, %13 : vector<8x24xf32>
    %c0_12 = arith.constant 0 : index
    %c0_13 = arith.constant 0 : index
    %15 = vector.load %arg6[%c0_12, %c0_13] : memref<24x4xf32, #tpu.memory_space<vmem>>, vector<24x4xf32>
    %cst_14 = arith.constant dense<0.000000e+00> : vector<8x4xf32>
    %16 = tpu.matmul %14, %15, %cst_14 {dimension_numbers = #tpu.dot_dimension_numbers<[1], [0], [0], [1], [0, 0, 1, 1], [], []>, precision = #tpu.contract_precision<fp32>} : vector<8x24xf32>, vector<24x4xf32>, vector<8x4xf32> -> vector<8x4xf32>
    %c0_15 = arith.constant 0 : index
    %c0_16 = arith.constant 0 : index
    %17 = vector.load %arg7[%c0_15, %c0_16] : memref<1x4xf32, #tpu.memory_space<vmem>>, vector<1x4xf32>
    %18 = vector.broadcast %17 : vector<1x4xf32> to vector<8x4xf32>
    %19 = arith.addf %16, %18 : vector<8x4xf32>
    %c0_17 = arith.constant 0 : index
    %c0_18 = arith.constant 0 : index
    %20 = vector.load %arg8[%c0_17, %c0_18] : memref<8x4xf32, #tpu.memory_space<vmem>>, vector<8x4xf32>
    tpu.vector_store %arg8[%c0_17, %c0_18], %19 {strides = array<i32>} : memref<8x4xf32, #tpu.memory_space<vmem>>, vector<8x4xf32>,
    return
  }
  func.func @transform_0(%arg0: i32) -> (i32, i32) {
    %c0_i32 = arith.constant 0 : i32
    %c0_i32_0 = arith.constant 0 : i32
    return %arg0, %c0_i32 : i32, i32
  }
  func.func @transform_1(%arg0: i32) -> (i32, i32) {
    %c0_i32 = arith.constant 0 : i32
    %c0_i32_0 = arith.constant 0 : i32
    %c0_i32_1 = arith.constant 0 : i32
    return %c0_i32, %c0_i32_0 : i32, i32
  }
  func.func @transform_2(%arg0: i32) -> (i32, i32) {
    %c0_i32 = arith.constant 0 : i32
    %c0_i32_0 = arith.constant 0 : i32
    %c0_i32_1 = arith.constant 0 : i32
    return %c0_i32, %c0_i32_0 : i32, i32
  }
  func.func @transform_3(%arg0: i32) -> (i32, i32) {
    %c0_i32 = arith.constant 0 : i32
    %c0_i32_0 = arith.constant 0 : i32
    %c0_i32_1 = arith.constant 0 : i32
    return %c0_i32, %c0_i32_0 : i32, i32
  }
  func.func @transform_4(%arg0: i32) -> (i32, i32) {
    %c0_i32 = arith.constant 0 : i32
    %c0_i32_0 = arith.constant 0 : i32
    %c0_i32_1 = arith.constant 0 : i32
    return %c0_i32, %c0_i32_0 : i32, i32
  }
  func.func @transform_5(%arg0: i32) -> (i32, i32) {
    %c0_i32 = arith.constant 0 : i32
    %c0_i32_0 = arith.constant 0 : i32
    %c0_i32_1 = arith.constant 0 : i32
    return %c0_i32, %c0_i32_0 : i32, i32
  }
  func.func @transform_6(%arg0: i32) -> (i32, i32) {
    %c0_i32 = arith.constant 0 : i32
    %c0_i32_0 = arith.constant 0 : i32
    %c0_i32_1 = arith.constant 0 : i32
    return %c0_i32, %c0_i32_0 : i32, i32
  }
  func.func @transform_7(%arg0: i32) -> (i32, i32) {
    %c0_i32 = arith.constant 0 : i32
    %c0_i32_0 = arith.constant 0 : i32
    return %arg0, %c0_i32 : i32, i32
  }
}

</mosaic_0001>

<bundles_post_ra>
// kernel: dqn_forward.1
= control target key start
LH: loop header
LB: loop body
LE: loop exit
PB: predicated region body
PF: predicated region fallthrough
CT: control target
= control target key end

     0   :  { %vm35_vm0 = vcmask 64512   ;;  %v1735_v0 = vmov 0.0   ;;  %vm1736_vm1 = vmmov 0   ;;  %v1737_v21 = vmov 0.0|0.0   ;;  %s1887_s1 = inlined_call_operand.vmem [shape: f32[8,24], index: 1, kind: input, shape index: {}]   ;;  %s1888_s0 = inlined_call_operand.vmem [shape: f32[8,8], index: 0, kind: input, shape index: {}]   ;;  %s1889_s3 = inlined_call_operand.vmem [shape: f32[24,24], index: 3, kind: input, shape index: {}]   ;;  %s1890_s2 = inlined_call_operand.vmem [shape: f32[1,24], index: 2, kind: input, shape index: {}]   ;;  %s1891_s5 = inlined_call_operand.vmem [shape: f32[24,4], index: 5, kind: input, shape index: {}]   ;;  %s1892_s4 = inlined_call_operand.vmem [shape: f32[1,24], index: 4, kind: input, shape index: {}]   ;;  %s1893_s6 = inlined_call_operand.vmem [shape: f32[1,4], index: 6, kind: input, shape index: {}]   ;;  %s1894_s7 = inlined_call_operand.vmem [shape: f32[8,4], index: 7, kind: output, shape index: {}]  }
   0x1   :  { %1532 = vmatprep.subr.mxu0 %v1735_v0  ;;  %v27_v1 = vld [vmem:[%s1887_s1] sm:$0xff]  ;;  %1534 = vmatprep.mubr.msk.f32.mxu0 %vm1736_vm1, %v1735_v0  ;;  %v487_v15 = vld [vmem:[%s1889_s3 + $0x8] sm:$0xff]  ;;  %v488_v22 = vld [vmem:[%s1889_s3 + $0x10] sm:$0xff]  ;;  %vm496_vm2 = vcmask 195584   ;;  %vm1458_vm3 = vcmask 31744  }
   0x2   :  { %v26_v2 = vld [vmem:[%s1888_s0] sm:$0xff]  ;;  %v40_v3 = vand.u32 4294901760, %v27_v1  ;;  %1527 = vmatprep.subr.mxu1 %v1735_v0  ;;  %1529 = vmatprep.mubr.msk.f32.mxu1 %vm1736_vm1, %v1735_v0  ;;  %v504_v17 = vand.u32 4294901760, %v487_v15  ;;  %v507_v23 = vand.u32 4294901760, %v488_v22  ;;  %v974_v52 = vld [vmem:[%s1891_s5 + $0x8] sm:$0xff]  ;;  %v975_v59 = vld [vmem:[%s1891_s5 + $0x10] sm:$0xff] }
   0x3   :  { %v37_v4 = vsel %vm35_vm0, %v26_v2, 0  ;;  %v486_v14 = vld [vmem:[%s1889_s3] sm:$0xff]  ;;  %v990_v54 = vand.u32 4294901760, %v974_v52  ;;  %v993_v62 = vand.u32 4294901760, %v975_v59 }
   0x4   :  { %v105_v5 = vand.u32 4294901760, %v37_v4  ;;  %v117_v6 = vsub.f32 %v27_v1, %v40_v3  ;;  %1528 = vmatpush3.msra.mxu1 %v40_v3  ;;  %v501_v16 = vand.u32 4294901760, %v486_v14  ;;  %v587_v20 = vsub.f32 %v487_v15, %v504_v17  ;;  %v1464_v35 = vld [vmem:[%s1890_s2] ss:$0 sm:$0xff] }
   0x5   :  { %1665 = vmatprep.subr.bf16.mxu1 %v1737_v21  ;;  %v594_v42 = vsub.f32 %v488_v22, %v507_v23  ;;  %v973_v51 = vld [vmem:[%s1891_s5] sm:$0xff]  ;;  %v1073_v56 = vsub.f32 %v974_v52, %v990_v54  ;;  %v1080_v2 = vsub.f32 %v975_v59, %v993_v62 }
   0x6   :  { %v106_v7 = vsub.f32 %v37_v4, %v105_v5  ;;  %v118_v8 = vand.u32 4294901760, %v117_v6  ;;  %v1812_v18 = vpack.c.bf16 %v504_v17, %v501_v16  ;;  %v580_v19 = vsub.f32 %v486_v14, %v501_v16 }
   0x7   :  { %v588_v25 = vand.u32 4294901760, %v587_v20  ;;  %v595_v45 = vand.u32 4294901760, %v594_v42  ;;  %v987_v53 = vand.u32 4294901760, %v973_v51  ;;  %v1074_v58 = vand.u32 4294901760, %v1073_v56 }
   0x8   :  { %v107_v9 = vand.u32 4294901760, %v106_v7  ;;  %v119_v10 = vsub.f32 %v117_v6, %v118_v8  ;;  %v581_v24 = vand.u32 4294901760, %v580_v19  ;;  %v1672_v31 = vpack.c.bf16 %v587_v20, %v580_v19 }
   0x9   :  { %v589_v27 = vsub.f32 %v587_v20, %v588_v25  ;;  %v596_v48 = vsub.f32 %v594_v42, %v595_v45  ;;  %v1066_v55 = vsub.f32 %v973_v51, %v987_v53  ;;  %v1075_v61 = vsub.f32 %v1073_v56, %v1074_v58 }
   0xa   :  { %v108_v11 = vsub.f32 %v106_v7, %v107_v9  ;;  %v120_v12 = vand.u32 4294901760, %v119_v10  ;;  %v582_v26 = vsub.f32 %v580_v19, %v581_v24  ;;  %v1678_v32 = vpack.c.bf16 %v588_v25, %v581_v24  ;;  %v1465_v10 = vld [vmem:[%s1892_s4] ss:$0 sm:$0xff] }
   0xb   :  { %v590_v29 = vand.u32 4294901760, %v589_v27  ;;  %v597_v50 = vand.u32 4294901760, %v596_v48  ;;  %v1067_v57 = vand.u32 4294901760, %v1066_v55  ;;  %v1076_v1 = vand.u32 4294901760, %v1075_v61  ;;  %v1466_v24 = vld [vmem:[%s1893_s6] ss:$0 sm:$0xff] }
   0xc   :  { %v109_v13 = vand.u32 4294901760, %v108_v11  ;;  %1533 = vmatpush3.msra.mxu0 %v120_v12  ;;  %v583_v28 = vand.u32 4294901760, %v582_v26  ;;  %v1081_v4 = vand.u32 4294901760, %v1080_v2 }
   0xd   :  { %1535 = vmatmul.mubr.f32.vlgmr.msra.gmra.mrb[0].mxu0 %v105_v5  ;;  %1537 = vmatprep.subr.mxu0 %v1735_v0  ;;  %v1068_v60 = vsub.f32 %v1066_v55, %v1067_v57 }
   0xe   :  { %1538 = vmatpush3.msra.mxu0 %v117_v6  ;;  %1539 = vmatprep.mubr.msk.f32.mxu0 %vm1736_vm1, %v1735_v0  ;;  %v1669_v30 = vpack.c.bf16 %v590_v29, %v583_v28 }
   0xf   :  { %1542 = vmatprep.subr.mxu0 %v1735_v0  ;;  %1530 = vmatmul.mubr.f32.vlgmr.msra.gmra.mrb[0].mxu1 %v109_v13  ;;  %v1069_v63 = vand.u32 4294901760, %v1068_v60 }
  0x10   :  { %1563 = vmatprep.mubr.msk.f32.mxu1 %vm1736_vm1, %v1735_v0  ;;  %1667 = vmatpush3.bf16.msra.mxu1 %v1812_v18 }
  0x11   :  { %1561 = vmatprep.subr.mxu1 %v1735_v0 }
  0x14   :  { %1562 = vmatpush3.msra.mxu1 %v507_v23 }
  0x15   :  { %1540 = vmatmul.mubr.f32.vlgmr.msra.gmra.mrb[0].mxu0 %v106_v7  ;;  %1668 = vmatprep.subr.bf16.mxu1 %v1737_v21  ;;  %v1690_v7 = vpack.c.bf16 %v1073_v56, %v1066_v55 }
  0x16   :  { %1543 = vmatpush3.msra.mxu0 %v40_v3  ;;  %1544 = vmatprep.mubr.msk.f32.mxu0 %vm1736_vm1, %v1735_v0 }
  0x17   :  { %1547 = vmatprep.subr.mxu0 %v1735_v0 }
  0x1d   :  { %1545 = vmatmul.mubr.f32.vlgmr.msra.gmra.mrb[0].mxu0 %v107_v9  ;;  %v1696_v9 = vpack.c.bf16 %v1074_v58, %v1067_v57 }
  0x1e   :  { %1548 = vmatpush3.msra.mxu0 %v118_v8  ;;  %1549 = vmatprep.mubr.msk.f32.mxu0 %vm1736_vm1, %v1735_v0  ;;  %v1684_v8 = vpack.c.bf16 %v990_v54, %v987_v53 }
  0x1f   :  { %1552 = vmatprep.subr.mxu0 %v1735_v0 }
  0x25   :  { %1550 = vmatmul.mubr.f32.vlgmr.msra.gmra.mrb[0].mxu0 %v105_v5 }
  0x26   :  { %1553 = vmatpush3.msra.mxu0 %v40_v3  ;;  %1554 = vmatprep.mubr.msk.f32.mxu0 %vm1736_vm1, %v1735_v0  ;;  %v1687_v3 = vpack.c.bf16 %v1076_v1, %v1069_v63 }
  0x27   :  { %1686 = vmatprep.subr.bf16.mxu0 %v1737_v21 }
  0x2d   :  { %1555 = vmatmul.mubr.f32.vlgmr.msra.gmra.mrb[0].mxu0 %v105_v5  ;;  %v1082_v5 = vsub.f32 %v1080_v2, %v1081_v4 }
  0x2e   :  { %1626 = vmatprep.mubr.msk.f32.mxu0 %vm1736_vm1, %v1735_v0  ;;  %1688 = vmatpush3.bf16.msra.mxu0 %v1687_v3 }
  0x2f   :  { %1624 = vmatprep.subr.mxu0 %v1735_v0  ;;  %v1083_v6 = vand.u32 4294901760, %v1082_v5 }
  0x32   :  { %1625 = vmatpush3.msra.mxu0 %v1083_v6 }
  0x33   :  { %1689 = vmatprep.subr.bf16.mxu0 %v1737_v21 }
  0xe2   :  { %v111_v33 = vpop.f32.mrb[0].mxu1 }
  0xe3   :  { %v1531_v34 = vpop.f32.mrb[1].mxu1  ;;  %v112_v36 = vadd.f32 %v1464_v35, %v111_v33 }
 0x100   :  { %v481_v37 = vpop.f32.mrb[0].mxu0 }
 0x101   :  { %v1702_v38 = vadd.f32 %v481_v37, %v112_v36  ;;  %v1556_v39 = vpop.f32.mrb[1].mxu0 }
 0x103   :  { %v485_v40 = vmax.f32 %v1702_v38, 0.0 }
 0x105   :  { %v498_v41 = vsel %vm496_vm2, %v485_v40, 0 }
 0x106   :  { %v568_v43 = vand.u32 4294901760, %v498_v41 }
 0x108   :  { %v569_v44 = vsub.f32 %v498_v41, %v568_v43 }
 0x10a   :  { %v570_v46 = vand.u32 4294901760, %v569_v44 }
 0x10c   :  { %v571_v47 = vsub.f32 %v569_v44, %v570_v46 }
 0x10e   :  { %v572_v49 = vand.u32 4294901760, %v571_v47 }
 0x110   :  { %1564 = vmatmul.mubr.f32.vlgmr.msra.gmra.mrb[2].mxu1 %v572_v49 }
 0x111   :  { %1670 = vmatpush3.bf16.msra.mxu1 %v1669_v30  ;;  %1572 = vmatprep.mubr.msk.f32.mxu1 %vm1736_vm1, %v1735_v0 }
 0x112   :  { %1570 = vmatprep.subr.mxu1 %v1735_v0 }
 0x115   :  { %1571 = vmatpush3.msra.mxu1 %v597_v50 }
 0x116   :  { %1671 = vmatprep.subr.bf16.mxu1 %v1737_v21 }
 0x118   :  { %1573 = vmatmul.mubr.f32.vlgmr.msra.gmra.mrb[2].mxu1 %v568_v43 }
 0x119   :  { %1673 = vmatpush3.bf16.msra.mxu1 %v1672_v31  ;;  %1581 = vmatprep.mubr.msk.f32.mxu1 %vm1736_vm1, %v1735_v0 }
 0x11a   :  { %1579 = vmatprep.subr.mxu1 %v1735_v0 }
 0x11d   :  { %1580 = vmatpush3.msra.mxu1 %v594_v42 }
 0x11e   :  { %1674 = vmatprep.subr.bf16.mxu1 %v1737_v21 }
 0x120   :  { %1582 = vmatmul.mubr.f32.vlgmr.msra.gmra.mrb[2].mxu1 %v569_v44 }
 0x121   :  { %1676 = vmatpush3.bf16.msra.mxu1 %v1812_v18  ;;  %1590 = vmatprep.mubr.msk.f32.mxu1 %vm1736_vm1, %v1735_v0 }
 0x122   :  { %1588 = vmatprep.subr.mxu1 %v1735_v0 }
 0x125   :  { %1589 = vmatpush3.msra.mxu1 %v507_v23 }
 0x126   :  { %1677 = vmatprep.subr.bf16.mxu1 %v1737_v21 }
 0x128   :  { %1591 = vmatmul.mubr.f32.vlgmr.msra.gmra.mrb[2].mxu1 %v570_v46 }
 0x129   :  { %1679 = vmatpush3.bf16.msra.mxu1 %v1678_v32  ;;  %1599 = vmatprep.mubr.msk.f32.mxu1 %vm1736_vm1, %v1735_v0 }
 0x12a   :  { %1597 = vmatprep.subr.mxu1 %v1735_v0 }
 0x12d   :  { %1598 = vmatpush3.msra.mxu1 %v595_v45 }
 0x12e   :  { %1680 = vmatprep.subr.bf16.mxu1 %v1737_v21 }
 0x130   :  { %1600 = vmatmul.mubr.f32.vlgmr.msra.gmra.mrb[2].mxu1 %v568_v43 }
 0x131   :  { %1682 = vmatpush3.bf16.msra.mxu1 %v1812_v18  ;;  %1608 = vmatprep.mubr.msk.f32.mxu1 %vm1736_vm1, %v1735_v0 }
 0x132   :  { %1606 = vmatprep.subr.mxu1 %v1735_v0 }
 0x135   :  { %1607 = vmatpush3.msra.mxu1 %v507_v23 }
 0x136   :  { %1683 = vmatprep.subr.bf16.mxu1 %v1737_v21 }
 0x138   :  { %1609 = vmatmul.mubr.f32.vlgmr.msra.gmra.mrb[2].mxu1 %v568_v43 }
 0x139   :  { %1617 = vmatprep.mubr.msk.f32.mxu1 %vm1736_vm1, %v1735_v0  ;;  %1685 = vmatpush3.bf16.msra.mxu1 %v1684_v8 }
 0x13a   :  { %1615 = vmatprep.subr.mxu1 %v1735_v0 }
 0x13d   :  { %1616 = vmatpush3.msra.mxu1 %v993_v62 }
 0x20b   :  { %v968_v11 = vpop.f32.mrb[2].mxu1 }
 0x20c   :  { %v1703_v12 = vadd.f32 %v1465_v10, %v968_v11  ;;  %v1610_v13 = vpop.f32.mrb[3].mxu1 }
 0x20e   :  { %v972_v14 = vmax.f32 %v1703_v12, 0.0 }
 0x210   :  { %v984_v15 = vsel %vm496_vm2, %v972_v14, 0 }
 0x211   :  { %v1054_v16 = vand.u32 4294901760, %v984_v15 }
 0x213   :  { %v1055_v17 = vsub.f32 %v984_v15, %v1054_v16  ;;  %1627 = vmatmul.mubr.f32.vlgmr.msra.gmra.mrb[2].mxu0 %v1054_v16 }
 0x214   :  { %1691 = vmatpush3.bf16.msra.mxu0 %v1690_v7  ;;  %1635 = vmatprep.mubr.msk.f32.mxu0 %vm1736_vm1, %v1735_v0 }
 0x215   :  { %v1056_v18 = vand.u32 4294901760, %v1055_v17  ;;  %1633 = vmatprep.subr.mxu0 %v1735_v0 }
 0x217   :  { %v1057_v19 = vsub.f32 %v1055_v17, %v1056_v18 }
 0x218   :  { %1634 = vmatpush3.msra.mxu0 %v1080_v2 }
 0x219   :  { %v1058_v20 = vand.u32 4294901760, %v1057_v19  ;;  %1692 = vmatprep.subr.bf16.mxu0 %v1737_v21 }
 0x21b   :  { %1618 = vmatmul.mubr.f32.vlgmr.msra.gmra.mrb[4].mxu1 %v1058_v20  ;;  %1636 = vmatmul.mubr.f32.vlgmr.msra.gmra.mrb[2].mxu0 %v1055_v17 }
 0x21c   :  { %1694 = vmatpush3.bf16.msra.mxu0 %v1684_v8  ;;  %1644 = vmatprep.mubr.msk.f32.mxu0 %vm1736_vm1, %v1735_v0 }
 0x21d   :  { %1642 = vmatprep.subr.mxu0 %v1735_v0 }
 0x220   :  { %1643 = vmatpush3.msra.mxu0 %v993_v62 }
 0x221   :  { %1695 = vmatprep.subr.bf16.mxu0 %v1737_v21 }
 0x223   :  { %1645 = vmatmul.mubr.f32.vlgmr.msra.gmra.mrb[2].mxu0 %v1056_v18 }
 0x224   :  { %1697 = vmatpush3.bf16.msra.mxu0 %v1696_v9  ;;  %1653 = vmatprep.mubr.msk.f32.mxu0 %vm1736_vm1, %v1735_v0 }
 0x225   :  { %1651 = vmatprep.subr.mxu0 %v1735_v0 }
 0x228   :  { %1652 = vmatpush3.msra.mxu0 %v1081_v4 }
 0x229   :  { %1698 = vmatprep.subr.bf16.mxu0 %v1737_v21 }
 0x22b   :  { %1654 = vmatmul.mubr.f32.vlgmr.msra.gmra.mrb[2].mxu0 %v1054_v16 }
 0x22c   :  { %1700 = vmatpush3.bf16.msra.mxu0 %v1684_v8  ;;  %1662 = vmatprep.mubr.msk.f32.mxu0 %vm1736_vm1, %v1735_v0 }
 0x22d   :  { %1660 = vmatprep.subr.mxu0 %v1735_v0 }
 0x230   :  { %1661 = vmatpush3.msra.mxu0 %v993_v62 }
 0x233   :  { %1663 = vmatmul.mubr.f32.vlgmr.msra.gmra.mrb[2].mxu0 %v1054_v16 }
 0x2ee   :  { %v1060_v22 = vpop.f32.mrb[4].mxu1 }
 0x2ef   :  { %v1619_v23 = vpop.f32.mrb[5].mxu1  ;;  %v1061_v25 = vadd.f32 %v1466_v24, %v1060_v22 }
 0x306   :  { %v1454_v26 = vpop.f32.mrb[2].mxu0 }
 0x307   :  { %v1705_v27 = vadd.f32 %v1454_v26, %v1061_v25  ;;  %v1664_v21 = vpop.f32.mrb[3].mxu0 }
 0x309   :  { %1459 = vst.msk [vmem:[%s1894_s7] sm:$0xff] %vm1458_vm3, %v1705_v27 }

</bundles_post_ra>
